<compile_context>
chip_gen: v6e
topology: v6e:2x2x1
jax: 0.10.0
libtpu: 0.0.40
codegen_flags: <defaults>
</compile_context>

<pallas_src>
import jax
import jax.numpy as jnp
from jax.experimental import pallas as pl
from jax.experimental.pallas import tpu as pltpu

IN_FEATURES = 1 * 28 * 28        # 784
HIDDEN = 100
OUT = 10
HIDDEN_PAD = 128                 # lane-padded hidden width
OUT_PAD = 128                    # lane-padded output width


def _round_up(x, m):
    return (x + m - 1) // m * m


def mlp_kernel(x_ref, w1_ref, b1_ref, w2_ref, b2_ref, out_ref):
    # x_ref:  (TILE_B, 784) bf16      w1_ref: (784, 128) bf16
    # b1_ref: (1, 128) f32            w2_ref: (128, 128) bf16
    # b2_ref: (1, 128) f32            out_ref: (TILE_B, 128) f32
    x = x_ref[...]
    # fc1 (bf16 MXU, f32 accumulate) + bias + ReLU
    h = jnp.dot(x, w1_ref[...], preferred_element_type=jnp.float32)
    h = jnp.maximum(h + b1_ref[...], 0.0)
    # fc2 (bf16 MXU, f32 accumulate) + bias
    out = jnp.dot(h.astype(jnp.bfloat16), w2_ref[...],
                  preferred_element_type=jnp.float32)
    out_ref[...] = (out + b2_ref[...]).astype(out_ref.dtype)


def mnist_forward(x_nchw, w1, b1, w2, b2, *, tile_b=1024):
    """x_nchw: (B, 1, 28, 28) float32 -> logits (B, 10) float32.

    w1: (784, 100), b1: (100,), w2: (100, 10), b2: (10,)  (torch weights
    transposed to (in_features, out_features)).
    """
    B = x_nchw.shape[0]
    x = x_nchw.reshape(B, IN_FEATURES).astype(jnp.bfloat16)

    # Batch tile: multiple of 16 (bf16 sublane packing); cap at tile_b so the
    # per-step VMEM footprint stays small (~2.5 MiB at tile_b=1024).
    tb = min(tile_b, _round_up(B, 16))
    b_pad = _round_up(B, tb)
    if b_pad != B:
        x = jnp.pad(x, ((0, b_pad - B), (0, 0)))

    # Zero-pad weights/biases to lane-dense 128-wide feature dims (done once,
    # outside the kernel).
    w1p = jnp.zeros((IN_FEATURES, HIDDEN_PAD), jnp.bfloat16)
    w1p = w1p.at[:, :HIDDEN].set(w1.astype(jnp.bfloat16))
    b1p = jnp.zeros((1, HIDDEN_PAD), jnp.float32).at[:, :HIDDEN].set(
        b1.reshape(1, -1).astype(jnp.float32))
    w2p = jnp.zeros((HIDDEN_PAD, OUT_PAD), jnp.bfloat16)
    w2p = w2p.at[:HIDDEN, :OUT].set(w2.astype(jnp.bfloat16))
    b2p = jnp.zeros((1, OUT_PAD), jnp.float32).at[:, :OUT].set(
        b2.reshape(1, -1).astype(jnp.float32))

    resident = lambda shape: pl.BlockSpec(shape, lambda i: (0, 0))

    out_pad = pl.pallas_call(
        mlp_kernel,
        out_shape=jax.ShapeDtypeStruct((b_pad, OUT_PAD), jnp.float32),
        grid=(b_pad // tb,),
        in_specs=[
            pl.BlockSpec((tb, IN_FEATURES), lambda i: (i, 0)),  # x: batch-tiled
            resident(w1p.shape),                                # resident weights
            resident(b1p.shape),
            resident(w2p.shape),
            resident(b2p.shape),
        ],
        out_specs=pl.BlockSpec((tb, OUT_PAD), lambda i: (i, 0)),
        compiler_params=pltpu.CompilerParams(
            dimension_semantics=("parallel",)),
    )(x, w1p, b1p, w2p, b2p)

    return out_pad[:B, :OUT]


def init_params(key):
    """Deterministic init mimicking torch.nn.Linear (U(-1/sqrt(fan_in), +))."""
    k1, k2, k3, k4 = jax.random.split(key, 4)
    bound1 = 1.0 / jnp.sqrt(IN_FEATURES)
    bound2 = 1.0 / jnp.sqrt(HIDDEN)
    # Stored as (in_features, out_features) == torch weight transposed.
    w1 = jax.random.uniform(k1, (IN_FEATURES, HIDDEN), jnp.float32, -bound1, bound1)
    b1 = jax.random.uniform(k2, (HIDDEN,), jnp.float32, -bound1, bound1)
    w2 = jax.random.uniform(k3, (HIDDEN, OUT), jnp.float32, -bound2, bound2)
    b2 = jax.random.uniform(k4, (OUT,), jnp.float32, -bound2, bound2)
    return w1, b1, w2, b2


if __name__ == "__main__":
    key = jax.random.PRNGKey(0)
    kx, kp = jax.random.split(key)

    B = 2
    x = jax.random.normal(kx, (B, 1, 28, 28), jnp.float32)  # NCHW like torch
    w1, b1, w2, b2 = init_params(kp)

    logits = mnist_forward(x, w1, b1, w2, b2)
    logits = jax.block_until_ready(logits)
    assert logits.shape == (B, 10)

    # Reference with matching precision (bf16 inputs, f32 accumulation).
    x_flat = x.reshape(B, -1).astype(jnp.bfloat16)
    h_ref = jnp.maximum(
        jnp.dot(x_flat, w1.astype(jnp.bfloat16),
                preferred_element_type=jnp.float32) + b1, 0.0)
    ref = jnp.dot(h_ref.astype(jnp.bfloat16), w2.astype(jnp.bfloat16),
                  preferred_element_type=jnp.float32) + b2
    assert jnp.allclose(logits, ref, atol=1e-2, rtol=1e-2)

    # Also sanity-check against the pure f32 math (looser, bf16 quantization).
    x_f32 = x.reshape(B, -1)
    ref_f32 = jnp.maximum(x_f32 @ w1 + b1, 0.0) @ w2 + b2
    assert jnp.allclose(logits, ref_f32, atol=5e-2, rtol=5e-2)

    print("KERNEL_OK")
</pallas_src>

<mosaic_0001>
module attributes {stable_mosaic.version = 11 : i64} {
  func.func @mlp_kernel(%arg0: i32, %arg1: memref<16x784xbf16, #tpu.memory_space<vmem>>, %arg2: memref<784x128xbf16, #tpu.memory_space<vmem>>, %arg3: memref<1x128xf32, #tpu.memory_space<vmem>>, %arg4: memref<128x128xbf16, #tpu.memory_space<vmem>>, %arg5: memref<1x128xf32, #tpu.memory_space<vmem>>, %arg6: memref<16x128xf32, #tpu.memory_space<vmem>>) attributes {dimension_semantics = [#tpu.dimension_semantics<parallel>], iteration_bounds = array<i64: 1>, scalar_prefetch = 0 : i64, scratch_operands = 0 : i64, tpu.core_type = #tpu.core_type<tc>, window_params = [{transform_indices = @transform_0, window_bounds = array<i64: 16, 784>}, {pipeline_mode = #tpu.pipeline_mode<synchronous>, transform_indices = @transform_1, window_bounds = array<i64: 784, 128>}, {pipeline_mode = #tpu.pipeline_mode<synchronous>, transform_indices = @transform_2, window_bounds = array<i64: 1, 128>}, {pipeline_mode = #tpu.pipeline_mode<synchronous>, transform_indices = @transform_3, window_bounds = array<i64: 128, 128>}, {pipeline_mode = #tpu.pipeline_mode<synchronous>, transform_indices = @transform_4, window_bounds = array<i64: 1, 128>}, {transform_indices = @transform_5, window_bounds = array<i64: 16, 128>}]} {
    %c0 = arith.constant 0 : index
    %c0_0 = arith.constant 0 : index
    %0 = vector.load %arg1[%c0, %c0_0] : memref<16x784xbf16, #tpu.memory_space<vmem>>, vector<16x784xbf16>
    %c0_1 = arith.constant 0 : index
    %c0_2 = arith.constant 0 : index
    %1 = vector.load %arg2[%c0_1, %c0_2] : memref<784x128xbf16, #tpu.memory_space<vmem>>, vector<784x128xbf16>
    %cst = arith.constant dense<0.000000e+00> : vector<16x128xf32>
    %2 = tpu.matmul %0, %1, %cst {dimension_numbers = #tpu.dot_dimension_numbers<[1], [0], [0], [1], [0, 0, 1, 1], [], []>} : vector<16x784xbf16>, vector<784x128xbf16>, vector<16x128xf32> -> vector<16x128xf32>
    %c0_3 = arith.constant 0 : index
    %c0_4 = arith.constant 0 : index
    %3 = vector.load %arg3[%c0_3, %c0_4] : memref<1x128xf32, #tpu.memory_space<vmem>>, vector<1x128xf32>
    %4 = vector.broadcast %3 : vector<1x128xf32> to vector<16x128xf32>
    %5 = arith.addf %2, %4 : vector<16x128xf32>
    %cst_5 = arith.constant 0.000000e+00 : f32
    %6 = vector.broadcast %cst_5 : f32 to vector<16x128xf32>
    %7 = arith.maximumf %5, %6 : vector<16x128xf32>
    %8 = arith.truncf %7 : vector<16x128xf32> to vector<16x128xbf16>
    %c0_6 = arith.constant 0 : index
    %c0_7 = arith.constant 0 : index
    %9 = vector.load %arg4[%c0_6, %c0_7] : memref<128x128xbf16, #tpu.memory_space<vmem>>, vector<128x128xbf16>
    %cst_8 = arith.constant dense<0.000000e+00> : vector<16x128xf32>
    %10 = tpu.matmul %8, %9, %cst_8 {dimension_numbers = #tpu.dot_dimension_numbers<[1], [0], [0], [1], [0, 0, 1, 1], [], []>} : vector<16x128xbf16>, vector<128x128xbf16>, vector<16x128xf32> -> vector<16x128xf32>
    %c0_9 = arith.constant 0 : index
    %c0_10 = arith.constant 0 : index
    %11 = vector.load %arg5[%c0_9, %c0_10] : memref<1x128xf32, #tpu.memory_space<vmem>>, vector<1x128xf32>
    %12 = vector.broadcast %11 : vector<1x128xf32> to vector<16x128xf32>
    %13 = arith.addf %10, %12 : vector<16x128xf32>
    %c0_11 = arith.constant 0 : index
    %c0_12 = arith.constant 0 : index
    %14 = vector.load %arg6[%c0_11, %c0_12] : memref<16x128xf32, #tpu.memory_space<vmem>>, vector<16x128xf32>
    tpu.vector_store %arg6[%c0_11, %c0_12], %13 {strides = array<i32>} : memref<16x128xf32, #tpu.memory_space<vmem>>, vector<16x128xf32>,
    return
  }
  func.func @transform_0(%arg0: i32) -> (i32, i32) {
    %c0_i32 = arith.constant 0 : i32
    %c0_i32_0 = arith.constant 0 : i32
    return %arg0, %c0_i32 : i32, i32
  }
  func.func @transform_1(%arg0: i32) -> (i32, i32) {
    %c0_i32 = arith.constant 0 : i32
    %c0_i32_0 = arith.constant 0 : i32
    %c0_i32_1 = arith.constant 0 : i32
    return %c0_i32, %c0_i32_0 : i32, i32
  }
  func.func @transform_2(%arg0: i32) -> (i32, i32) {
    %c0_i32 = arith.constant 0 : i32
    %c0_i32_0 = arith.constant 0 : i32
    %c0_i32_1 = arith.constant 0 : i32
    return %c0_i32, %c0_i32_0 : i32, i32
  }
  func.func @transform_3(%arg0: i32) -> (i32, i32) {
    %c0_i32 = arith.constant 0 : i32
    %c0_i32_0 = arith.constant 0 : i32
    %c0_i32_1 = arith.constant 0 : i32
    return %c0_i32, %c0_i32_0 : i32, i32
  }
  func.func @transform_4(%arg0: i32) -> (i32, i32) {
    %c0_i32 = arith.constant 0 : i32
    %c0_i32_0 = arith.constant 0 : i32
    %c0_i32_1 = arith.constant 0 : i32
    return %c0_i32, %c0_i32_0 : i32, i32
  }
  func.func @transform_5(%arg0: i32) -> (i32, i32) {
    %c0_i32 = arith.constant 0 : i32
    %c0_i32_0 = arith.constant 0 : i32
    return %arg0, %c0_i32 : i32, i32
  }
}

</mosaic_0001>

<bundles_post_ra>
// kernel: tpu_custom_call.1
= control target key start
LH: loop header
LB: loop body
LE: loop exit
PB: predicated region body
PF: predicated region fallthrough
CT: control target
= control target key end

     0   :  { %10 = vsyncpa [#allocation3], 0  ;;  %s1216_s0 = inlined_call_operand.hbm [shape: bf16[16,784], index: 0, kind: input, shape index: {}]   ;;  %s1217_s1 = inlined_call_operand.hbm [shape: bf16[784,128], index: 1, kind: input, shape index: {}]   ;;  %s1218_s2 = inlined_call_operand.vmem [shape: f32[1,128], index: 2, kind: input, shape index: {}]   ;;  %s1219_s3 = inlined_call_operand.hbm [shape: bf16[128,128], index: 3, kind: input, shape index: {}]   ;;  %s1220_s4 = inlined_call_operand.vmem [shape: f32[1,128], index: 4, kind: input, shape index: {}]   ;;  %s1221_s5 = inlined_call_operand.hbm [shape: f32[16,128], index: 5, kind: output, shape index: {}]  }
   0x1   :  { %11 = vsyncpa [#allocation6], 0 }
   0x2   :  { %12 = vsyncpa [#allocation4], 0  ;;  %s1143_s18 = smov [#allocation5]  }
   0x3   :  { %s30_s19 = sshll.u32 %s1143_s18, 4  ;;  %s31_s19 = int_to_ptr.vmem [resolvable:$true] %s30_s19 }
   0x4   :  { %s1065_s20 = scalar_lea.vmem %s31_s19, 6272  ;;  %p1070_p1 = scmp.lt.s32.totalorder %s31_s19, %s31_s19 }
   0x5   :  { %p1066_p0 = scmp.ne.s32.totalorder %s31_s19, %s1065_s20  ;;  %p1071_p2 = scmp.lt.s32.totalorder %s1065_s20, %s1065_s20 }
   0x7   :  { %p1072_p3 = por %p1071_p2, %p1070_p1 }
   0x9   :  { %p1073_p4 = pnand %p1072_p3, %p1066_p0 }
   0xb   :  { %1076 = shalt.err (!%p1073_p4)
}
   0xc   :  { %s1144_s21 = smov 64   ;;  %s1145_s22 = smov 4  }
   0xd   :  { %36 = dma.hbm_to_vmem [thread:$0]  %s1217_s1, 6272, %s31_s19, [#allocation6], %s1144_s21, %s1144_s21, %s1145_s22  }
   0xe   :  { %s1146_s25 = smov [#allocation2]  }
   0xf   :  { %s18_s26 = sshll.u32 %s1146_s25, 4  ;;  %s19_s26 = int_to_ptr.vmem [resolvable:$true] %s18_s26 }
  0x10   :  { %s1085_s27 = scalar_lea.vmem %s19_s26, 896  ;;  %p1090_p6 = scmp.lt.s32.totalorder %s19_s26, %s19_s26 }
  0x11   :  { %p1086_p5 = scmp.ne.s32.totalorder %s19_s26, %s1085_s27  ;;  %p1091_p7 = scmp.lt.s32.totalorder %s1085_s27, %s1085_s27 }
  0x13   :  { %p1092_p8 = por %p1091_p7, %p1090_p6 }
  0x15   :  { %p1093_p9 = pnand %p1092_p8, %p1086_p5 }
  0x17   :  { %1096 = shalt.err (!%p1093_p9)
}
  0x18   :  { %s1147_s28 = smov 448   ;;  %s1148_s29 = smov 28  }
  0x19   :  { %24 = dma.hbm_to_vmem [thread:$0]  %s1216_s0, 896, %s19_s26, [#allocation3], %s1147_s28, %s1147_s28, %s1148_s29  }
  0x1a   :  { %s1149_s7 = smov [#allocation7]  }
  0x1b   :  { %s44_s8 = sshll.u32 %s1149_s7, 4  ;;  %s45_s8 = int_to_ptr.vmem [resolvable:$true] %s44_s8 }
  0x1c   :  { %s1105_s1 = scalar_lea.vmem %s45_s8, 1024  ;;  %p1110_p11 = scmp.lt.s32.totalorder %s45_s8, %s45_s8 }
  0x1d   :  { %p1106_p10 = scmp.ne.s32.totalorder %s45_s8, %s1105_s1  ;;  %p1111_p12 = scmp.lt.s32.totalorder %s1105_s1, %s1105_s1 }
  0x1f   :  { %p1112_p13 = por %p1111_p12, %p1110_p11 }
  0x21   :  { %p1113_p0 = pnand %p1112_p13, %p1106_p10 }
  0x23   :  { %1116 = shalt.err (!%p1113_p0)
}
  0x24   :  { %50 = dma.hbm_to_vmem [thread:$0]  %s1219_s3, 1024, %s45_s8, [#allocation6], %s1144_s21, %s1144_s21, %s1145_s22  }
  0x25   :  { %1137 = dma.done.wait [#allocation3], 896  }
  0x26   :  { %1138 = vsyncadd [#allocation3], 4294966400 }
  0x27   :  { %1139 = dma.done.wait [#allocation6], 7296  }
  0x28   :  { %1140 = vsyncadd [#allocation6], 4294960000  ;;  %v990_v0 = vld [vmem:[#allocation5 + $0x78] sm:$0xff]   ;;  %v994_v4 = vld [vmem:[#allocation5 + $0x70] sm:$0xff]   ;;  %v1150_v38 = vmov 0.0   ;;  %vm1151_vm0 = vmmov 0  }
  0x29   :  { %v991_v1 = vld [vmem:[#allocation5 + $0x38] sm:$0xff]   ;;  %875 = vmatprep.subr.bf16.mxu0 %v990_v0  ;;  %v995_v5 = vld [vmem:[#allocation5 + $0x30] sm:$0xff]   ;;  %v998_v8 = vld [vmem:[#allocation5 + $0x68] sm:$0xff]   ;;  %vm505_vm1 = vcmask 130048   ;;  %s1152_s12 = smov [#allocation8]  }
  0x2a   :  { %v992_v2 = vld [vmem:[#allocation5 + $0xf8] sm:$0xff]   ;;  %876 = vmatpush3.bf16.msra.mxu0 %v991_v1  ;;  %v996_v6 = vld [vmem:[#allocation5 + $0xf0] sm:$0xff]   ;;  %v999_v9 = vld [vmem:[#allocation5 + $0x28] sm:$0xff]   ;;  %s795_s13 = sshll.u32 %s1152_s12, 4  ;;  %s796_s13 = int_to_ptr.vmem [resolvable:$true] %s795_s13 }
  0x2b   :  { %v993_v3 = vld [vmem:[#allocation5 + $0xb8] sm:$0xff]   ;;  %897 = vmatprep.subr.bf16.mxu1 %v992_v2  ;;  %877 = vmatprep.subr.bf16.mxu0 %v994_v4  ;;  %v997_v7 = vld [vmem:[#allocation5 + $0xb0] sm:$0xff]   ;;  %v1000_v10 = vld [vmem:[#allocation5 + $0xe8] sm:$0xff]   ;;  %s1117_s14 = scalar_lea.vmem %s796_s13, 256  ;;  %p1122_p2 = scmp.lt.s32.totalorder %s796_s13, %s796_s13 }
  0x2c   :  { %898 = vmatpush3.bf16.msra.mxu1 %v993_v3  ;;  %v1001_v11 = vld [vmem:[#allocation5 + $0xa8] sm:$0xff]   ;;  %v1002_v12 = vld [vmem:[#allocation5 + $0x60] sm:$0xff]   ;;  %v1006_v16 = vld [vmem:[#allocation5 + $0x58] sm:$0xff]   ;;  %p1118_p1 = scmp.ne.s32.totalorder %s796_s13, %s1117_s14  ;;  %p1123_p3 = scmp.lt.s32.totalorder %s1117_s14, %s1117_s14 }
  0x2d   :  { %899 = vmatprep.subr.bf16.mxu1 %v996_v6  ;;  %v1003_v13 = vld [vmem:[#allocation5 + $0x20] sm:$0xff]   ;;  %v1007_v17 = vld [vmem:[#allocation5 + $0x18] sm:$0xff]   ;;  %v1010_v20 = vld [vmem:[#allocation5 + $0x50] sm:$0xff]  }
  0x2e   :  { %878 = vmatpush3.bf16.msra.mxu0 %v995_v5  ;;  %v1004_v14 = vld [vmem:[#allocation5 + $0xe0] sm:$0xff]   ;;  %v1008_v18 = vld [vmem:[#allocation5 + $0xd8] sm:$0xff]   ;;  %v1011_v21 = vld [vmem:[#allocation5 + $0x10] sm:$0xff]   ;;  %p1124_p4 = por %p1123_p3, %p1122_p2 }
  0x2f   :  { %879 = vmatprep.subr.bf16.mxu0 %v998_v8  ;;  %v1005_v15 = vld [vmem:[#allocation5 + $0xa0] sm:$0xff]   ;;  %v1009_v19 = vld [vmem:[#allocation5 + $0x98] sm:$0xff]   ;;  %v1012_v22 = vld [vmem:[#allocation5 + $0xd0] sm:$0xff]  }
  0x30   :  { %900 = vmatpush3.bf16.msra.mxu1 %v997_v7  ;;  %v1013_v23 = vld [vmem:[#allocation5 + $0x90] sm:$0xff]   ;;  %v1014_v24 = vld [vmem:[#allocation5 + $0x48] sm:$0xff]   ;;  %v1018_v28 = vld [vmem:[#allocation5 + $0x40] sm:$0xff]   ;;  %p1125_p5 = pnand %p1124_p4, %p1118_p1 }
  0x31   :  { %901 = vmatprep.subr.bf16.mxu1 %v1000_v10  ;;  %v1015_v25 = vld [vmem:[#allocation5 + $0x8] sm:$0xff]   ;;  %v1019_v29 = vld [vmem:[#allocation5] sm:$0xff]   ;;  %v1025_v34 = vld [vmem:[#allocation5 + $0x178] sm:$0xff]  }
  0x32   :  { %880 = vmatpush3.bf16.msra.mxu0 %v999_v9  ;;  %v1016_v26 = vld [vmem:[#allocation5 + $0xc8] sm:$0xff]   ;;  %v1020_v30 = vld [vmem:[#allocation5 + $0xc0] sm:$0xff]   ;;  %v1028_v36 = vld [vmem:[#allocation2 + $0xc] ss:$28 sps:$4 sm:$0xff]  }
  0x33   :  { %881 = vmatprep.subr.bf16.mxu0 %v1002_v12  ;;  %v1017_v27 = vld [vmem:[#allocation5 + $0x88] sm:$0xff]   ;;  %v1024_v33 = vld [vmem:[#allocation5 + $0x80] sm:$0xff]   ;;  %v1029_v37 = vld [vmem:[#allocation5 + $0x138] sm:$0xff]   ;;  %582 = vmatprep.mubr.bf16.mxu1 %v1028_v36 }
  0x34   :  { %902 = vmatpush3.bf16.msra.mxu1 %v1001_v11  ;;  %v1021_v31 = vld [vmem:[#allocation2] ss:$28 sps:$4 sm:$0xff]   ;;  %v1026_v35 = vld [vmem:[#allocation2 + $0x8] ss:$28 sps:$4 sm:$0xff]   ;;  %v1036_v45 = vld [vmem:[#allocation5 + $0x158] sm:$0xff]  }
  0x35   :  { %903 = vmatprep.subr.bf16.mxu1 %v1004_v14  ;;  %v1023_v32 = vld [vmem:[#allocation2 + $0x4] ss:$28 sps:$4 sm:$0xff]   ;;  %v1030_v39 = vld [vmem:[#allocation5 + $0x170] sm:$0xff]   ;;  %v1034_v43 = vld [vmem:[#allocation5 + $0x160] sm:$0xff]  }
  0x36   :  { %882 = vmatpush3.bf16.msra.mxu0 %v1003_v13  ;;  %541 = vmatprep.mubr.bf16.mxu0 %v1023_v32  ;;  %v1031_v40 = vld [vmem:[#allocation5 + $0x130] sm:$0xff]   ;;  %v1032_v41 = vld [vmem:[#allocation5 + $0x168] sm:$0xff]   ;;  %v1035_v44 = vld [vmem:[#allocation5 + $0x120] sm:$0xff]  }
  0x37   :  { %883 = vmatprep.subr.bf16.mxu0 %v1006_v16  ;;  %v1033_v42 = vld [vmem:[#allocation5 + $0x128] sm:$0xff]   ;;  %v1037_v46 = vld [vmem:[#allocation5 + $0x118] sm:$0xff]   ;;  %v1038_v47 = vld [vmem:[#allocation5 + $0x150] sm:$0xff]  }
  0x38   :  { %904 = vmatpush3.bf16.msra.mxu1 %v1005_v15  ;;  %v1044_v48 = vld [vmem:[#allocation5 + $0x180] sm:$0xff]   ;;  %v1039_v49 = vld [vmem:[#allocation5 + $0x110] sm:$0xff]   ;;  %v1047_v50 = vld [vmem:[#allocation2 + $0x14] ss:$28 sps:$4 sm:$0xff]  }
  0x39   :  { %905 = vmatprep.subr.bf16.mxu1 %v1008_v18  ;;  %v1040_v51 = vld [vmem:[#allocation5 + $0x148] sm:$0xff]   ;;  %v1048_v52 = vld [vmem:[#allocation2 + $0x18] ss:$28 sps:$4 sm:$0xff]   ;;  %v1045_v56 = vld [vmem:[#allocation2 + $0x10] ss:$28 sps:$4 sm:$0xff]  }
  0x3a   :  { %884 = vmatpush3.bf16.msra.mxu0 %v1007_v17  ;;  %v1041_v53 = vld [vmem:[#allocation5 + $0x108] sm:$0xff]   ;;  %v1042_v54 = vld [vmem:[#allocation5 + $0x140] sm:$0xff]   ;;  %v1050_v58 = vld [vmem:[#allocation7 + $0x30] sm:$0xff]  }
  0x3b   :  { %885 = vmatprep.subr.bf16.mxu0 %v1010_v20  ;;  %v1043_v55 = vld [vmem:[#allocation5 + $0x100] sm:$0xff]   ;;  %v1051_v59 = vld [vmem:[#allocation7 + $0x28] sm:$0xff]   ;;  %v1052_v60 = vld [vmem:[#allocation7 + $0x20] sm:$0xff]  }
  0x3c   :  { %906 = vmatpush3.bf16.msra.mxu1 %v1009_v19  ;;  %v1049_v57 = vld [vmem:[#allocation7 + $0x38] sm:$0xff]   ;;  %v1054_v62 = vld [vmem:[#allocation7 + $0x10] sm:$0xff]   ;;  %v1055_v63 = vld [vmem:[#allocation7 + $0x8] sm:$0xff]  }
  0x3d   :  { %907 = vmatprep.subr.bf16.mxu1 %v1012_v22  ;;  %v1053_v61 = vld [vmem:[#allocation7 + $0x18] sm:$0xff]   ;;  %v1056_v0 = vld [vmem:[#allocation7] sm:$0xff]  }
  0x3e   :  { %886 = vmatpush3.bf16.msra.mxu0 %v1011_v21  ;;  %v808_v13 = vld [vmem:[%s1218_s2] ss:$0 sm:$0xff] }
  0x3f   :  { %887 = vmatprep.subr.bf16.mxu0 %v1014_v24 }
  0x40   :  { %908 = vmatpush3.bf16.msra.mxu1 %v1013_v23 }
  0x41   :  { %909 = vmatprep.subr.bf16.mxu1 %v1016_v26 }
  0x42   :  { %888 = vmatpush3.bf16.msra.mxu0 %v1015_v25 }
  0x43   :  { %889 = vmatprep.subr.bf16.mxu0 %v1018_v28 }
  0x44   :  { %910 = vmatpush3.bf16.msra.mxu1 %v1017_v27 }
  0x45   :  { %911 = vmatprep.subr.bf16.mxu1 %v1020_v30 }
  0x46   :  { %890 = vmatpush3.bf16.msra.mxu0 %v1019_v29 }
  0x47   :  { %919 = vmatprep.subr.bf16.mxu0 %v1025_v34 }
  0x48   :  { %912 = vmatpush3.bf16.msra.mxu1 %v1024_v33 }
  0x49   :  { %542 = vmatmul.mubr.bf16.vlgmr.msra.gmra.mxu0 %v1021_v31  ;;  %952 = vmatprep.subr.bf16.mxu1 %v1150_v38 }
  0x4a   :  { %920 = vmatpush3.bf16.msra.mxu0 %v1029_v37  ;;  %623 = vmatprep.mubr.bf16.mxu0 %v1047_v50 }
  0x4b   :  { %583 = vmatmul.mubr.bf16.vlgmr.msra.gmra.mxu1 %v1026_v35  ;;  %921 = vmatprep.subr.bf16.mxu0 %v1030_v39  ;;  %v866_v35 = vld [vmem:[%s1220_s4] ss:$0 sm:$0xff] }
  0x4c   :  { %954 = vmatprep.mubr.msk.bf16.mxu1 %vm1151_vm0, %v1150_v38  ;;  %953 = vmatpush3.bf16.msra.mxu1 %v1044_v48 }
  0x4d   :  { %958 = vmatprep.subr.bf16.mxu1 %v1150_v38 }
  0x4e   :  { %922 = vmatpush3.bf16.msra.mxu0 %v1031_v40 }
  0x4f   :  { %923 = vmatprep.subr.bf16.mxu0 %v1032_v41 }
  0x52   :  { %924 = vmatpush3.bf16.msra.mxu0 %v1033_v42 }
  0x53   :  { %925 = vmatprep.subr.bf16.mxu0 %v1034_v43  ;;  %955 = vmatmul.mubr.msk.bf16.vlgmr.msra.gmra.mxu1 %vm505_vm1, %v1048_v52 }
  0x54   :  { %974 = vmatprep.mubr.msk.bf16.mxu1 %vm1151_vm0, %v1150_v38  ;;  %959 = vmatpush3.bf16.msra.mxu1 %v1049_v57 }
  0x55   :  { %960 = vmatprep.subr.bf16.mxu1 %v1150_v38 }
  0x56   :  { %926 = vmatpush3.bf16.msra.mxu0 %v1035_v44 }
  0x57   :  { %927 = vmatprep.subr.bf16.mxu0 %v1036_v45 }
  0x58   :  { %961 = vmatpush3.bf16.msra.mxu1 %v1050_v58 }
  0x59   :  { %962 = vmatprep.subr.bf16.mxu1 %v1150_v38 }
  0x5a   :  { %928 = vmatpush3.bf16.msra.mxu0 %v1037_v46 }
  0x5b   :  { %929 = vmatprep.subr.bf16.mxu0 %v1038_v47 }
  0x5c   :  { %963 = vmatpush3.bf16.msra.mxu1 %v1051_v59 }
  0x5d   :  { %964 = vmatprep.subr.bf16.mxu1 %v1150_v38 }
  0x5e   :  { %930 = vmatpush3.bf16.msra.mxu0 %v1039_v49 }
  0x5f   :  { %931 = vmatprep.subr.bf16.mxu0 %v1040_v51 }
  0x60   :  { %965 = vmatpush3.bf16.msra.mxu1 %v1052_v60 }
  0x61   :  { %966 = vmatprep.subr.bf16.mxu1 %v1150_v38 }
  0x62   :  { %932 = vmatpush3.bf16.msra.mxu0 %v1041_v53 }
  0x63   :  { %933 = vmatprep.subr.bf16.mxu0 %v1042_v54 }
  0x64   :  { %967 = vmatpush3.bf16.msra.mxu1 %v1053_v61 }
  0x65   :  { %968 = vmatprep.subr.bf16.mxu1 %v1150_v38 }
  0x66   :  { %934 = vmatpush3.bf16.msra.mxu0 %v1043_v55 }
  0x68   :  { %969 = vmatpush3.bf16.msra.mxu1 %v1054_v62 }
  0x69   :  { %624 = vmatmul.mubr.bf16.vlgmr.msra.gmra.mxu0 %v1045_v56  ;;  %970 = vmatprep.subr.bf16.mxu1 %v1150_v38 }
  0x6c   :  { %971 = vmatpush3.bf16.msra.mxu1 %v1055_v63 }
  0x6d   :  { %972 = vmatprep.subr.bf16.mxu1 %v1150_v38 }
  0x70   :  { %973 = vmatpush3.bf16.msra.mxu1 %v1056_v0 }
 0x109   :  { %v891_v4 = vpop.f32.mrf.mxu0 }
 0x10b   :  { %v913_v1 = vpop.f32.mrf.mxu1  ;;  %v892_v7 = vpop.f32.mrf.mxu0 }
 0x10c   :  { %v893_v12 = vadd.f32 %v892_v7, %v891_v4 }
 0x10d   :  { %v914_v2 = vpop.f32.mrf.mxu1  ;;  %v894_v10 = vpop.f32.mrf.mxu0 }
 0x10e   :  { %v544_v15 = vadd.f32 %v893_v12, %v808_v13  ;;  %v915_v16 = vadd.f32 %v914_v2, %v913_v1 }
 0x10f   :  { %v916_v3 = vpop.f32.mrf.mxu1  ;;  %v895_v14 = vpop.f32.mrf.mxu0 }
 0x110   :  { %v896_v17 = vadd.f32 %v895_v14, %v894_v10  ;;  %v585_v20 = vadd.f32 %v915_v16, %v544_v15 }
 0x111   :  { %v917_v5 = vpop.f32.mrf.mxu1 }
 0x112   :  { %v547_v21 = vadd.f32 %v896_v17, %v808_v13  ;;  %v918_v22 = vadd.f32 %v917_v5, %v916_v3 }
 0x113   :  { %v666_v6 = vpop.f32.mrf.mxu1 }
 0x114   :  { %v588_v27 = vadd.f32 %v918_v22, %v547_v21 }
 0x115   :  { %v956_v8 = vpop.f32.mrf.mxu1 }
 0x117   :  { %v669_v9 = vpop.f32.mrf.mxu1 }
 0x119   :  { %v957_v11 = vpop.f32.mrf.mxu1 }
 0x129   :  { %v935_v18 = vpop.f32.mrf.mxu0 }
 0x12b   :  { %v936_v19 = vpop.f32.mrf.mxu0 }
 0x12c   :  { %v937_v23 = vadd.f32 %v936_v19, %v935_v18 }
 0x12d   :  { %v938_v24 = vpop.f32.mrf.mxu0 }
 0x12e   :  { %v626_v25 = vadd.f32 %v937_v23, %v585_v20 }
 0x12f   :  { %v939_v26 = vpop.f32.mrf.mxu0 }
 0x130   :  { %v940_v28 = vadd.f32 %v939_v26, %v938_v24  ;;  %v667_v29 = vadd.f32 %v666_v6, %v626_v25 }
 0x132   :  { %v629_v30 = vadd.f32 %v940_v28, %v588_v27  ;;  %v673_v32 = vmax.f32 %v667_v29, 0.0 }
 0x134   :  { %v670_v31 = vadd.f32 %v669_v9, %v629_v30 }
 0x136   :  { %v674_v33 = vmax.f32 %v670_v31, 0.0 }
 0x138   :  { %v675_v34 = vpack.c.bf16 %v674_v33, %v673_v32 }
 0x13a   :  { %975 = vmatmul.mubr.bf16.vlgmr.msra.gmra.mxu1 %v675_v34 }
 0x1fa   :  { %v781_v36 = vpop.f32.mrf.mxu1 }
 0x1fb   :  { %v782_v37 = vadd.f32 %v866_v35, %v781_v36 }
 0x1fc   :  { %v976_v38 = vpop.f32.mrf.mxu1 }
 0x1fd   :  { %788 = vst [vmem:[#allocation8] sm:$0xff] %v782_v37 }
 0x1fe   :  { %v784_v39 = vpop.f32.mrf.mxu1 }
 0x1ff   :  { %v785_v40 = vadd.f32 %v866_v35, %v784_v39 }
 0x200   :  { %v977_v41 = vpop.f32.mrf.mxu1 }
 0x201   :  { %789 = vst [vmem:[#allocation8 + $0x8] sm:$0xff] %v785_v40 }
 0x202   :  { %1128 = shalt.err (!%p1125_p5)
}
 0x203   :  { %s1153_s15 = smov 128   ;;  %s1154_s4 = smov 8  }
 0x204   :  { %801 = dma.vmem_to_hbm [thread:$0]  %s796_s13, 256, %s1221_s5, [#allocation4], %s1153_s15, %s1153_s15, %s1154_s4  }
 0x205   :  { %1141 = dma.done.wait [#allocation4], 256  }
 0x206   :  { %1142 = vsyncadd [#allocation4], 4294967040 }
 0x207   :  { %805 = vsyncpa [#allocation3], 1 }
 0x208   :  { %806 = vsyncpa [#allocation6], 1 }
 0x209   :  { %807 = vsyncpa [#allocation4], 1 }

</bundles_post_ra>
